<compile_context>
chip_gen: v7x
topology: tpu7x:2x2x1
jax: 0.10.0
libtpu: 0.0.40
codegen_flags: <defaults>
</compile_context>

<pallas_src>
import math

import jax
import jax.numpy as jnp
from jax.experimental import pallas as pl
from jax.experimental.pallas import tpu as pltpu

# ---------------- hyperparameters (small, deterministic) ----------------
IN_DIM = 4
N_NODES = 32
HIDDEN_LAYER = 3
N_BLOCKS = 2
BATCH = 8            # samples per BatchNorm group (= one PyTorch forward call)
NUM_GROUPS = 16      # independent groups evaluated by one pallas_call
BATCH_NORM = True
BN_EPS = 1e-5        # PyTorch BatchNorm1d default

# 7 Linear->ReLU->BN layers: 1 input CLinear + N_BLOCKS * HIDDEN_LAYER block layers
L_TOTAL = 1 + N_BLOCKS * HIDDEN_LAYER

# vstack row layout (all rows are (1, N_NODES)):
IDX_BIAS0 = 0                      # rows [0, L)        : linear biases
IDX_GAMMA0 = L_TOTAL               # rows [L, 2L)       : BN gammas
IDX_BETA0 = 2 * L_TOTAL            # rows [2L, 3L)      : BN betas
IDX_WL = 3 * L_TOTAL               # row  3L            : final weight row (n_nodes -> 1)
IDX_BL = 3 * L_TOTAL + 1           # row  3L+1          : final bias, broadcast across lanes
N_VEC = 3 * L_TOTAL + 2


# ---------------- Pallas kernel ----------------
def _clinear(h, w_ref, v_ref, i):
    """Linear -> ReLU -> BatchNorm1d (training-mode batch statistics, affine)."""
    out = jnp.dot(h, w_ref[i], preferred_element_type=jnp.float32) + v_ref[IDX_BIAS0 + i]
    out = jnp.maximum(out, 0.0)
    if BATCH_NORM:
        # Fused statistics: a single cross-sublane reduce over the lane-concatenated
        # [out, out*out] block (8 x 64, still one vreg) yields E[x] and E[x^2] together.
        both = jnp.concatenate([out, out * out], axis=-1)             # (B, 2N)
        stats = jnp.sum(both, axis=0, keepdims=True) * (1.0 / BATCH)  # (1, 2N)
        mean = stats[:, :N_NODES]
        # Clamp the one-pass variance: f32 cancellation can make it slightly negative.
        var = jnp.maximum(stats[:, N_NODES:] - mean * mean, 0.0)
        out = (out - mean) * jax.lax.rsqrt(var + BN_EPS)
        out = out * v_ref[IDX_GAMMA0 + i] + v_ref[IDX_BETA0 + i]
    return out


def _resnet_kernel(xc_ref, w_ref, v_ref, out_ref):
    # xc_ref: (BATCH, N_NODES) = cat([x, condition]) zero-padded to N_NODES lanes.
    # First CLinear: the padded input against the padded (N_NODES, N_NODES) weight is
    # exactly cat([x, c]) @ W1 + b1 (extra rows/cols are zero) -- one uniform MXU push,
    # no sub-tile slicing of w1.
    h = _clinear(xc_ref[...], w_ref, v_ref, 0)

    # BasicBlocks: residual around a stack of HIDDEN_LAYER CLinears.
    layer = 1
    for _ in range(N_BLOCKS):
        z = h
        for _ in range(HIDDEN_LAYER):
            z = _clinear(z, w_ref, v_ref, layer)
            layer += 1
        h = h + z

    # Final CLinear (n_nodes -> 1): VPU multiply + lane reduction, no MXU push.
    wl = v_ref[IDX_WL]                                   # (1, N_NODES)
    bl = v_ref[IDX_BL][:, :1]                            # (1, 1)
    out_ref[...] = jnp.sum(h * wl, axis=-1, keepdims=True) + bl


# ---------------- wrapper ----------------
@jax.jit
def _resnet_forward_grouped(x, condition, params):
    """x, condition: (G, BATCH, IN_DIM) f32. Returns (G, BATCH, 1) logits."""
    G = x.shape[0]
    # Build cat([x, condition]) zero-padded to N_NODES lanes (pairs with the zero-padded
    # first-layer weight so the kernel needs no in-tile slicing).
    pad = jnp.zeros((G, BATCH, N_NODES - 2 * IN_DIM), jnp.float32)
    xc = jnp.concatenate(
        [x.astype(jnp.float32), condition.astype(jnp.float32), pad], axis=-1)

    grid_spec = pltpu.PrefetchScalarGridSpec(
        num_scalar_prefetch=0,
        grid=(G,),
        in_specs=[
            # per-group activations: re-fetched each grid step
            pl.BlockSpec((None, BATCH, N_NODES), lambda g: (g, 0, 0)),
            # parameters: constant block index -> DMA'd once, VMEM-resident across steps
            pl.BlockSpec((L_TOTAL, N_NODES, N_NODES), lambda g: (0, 0, 0)),
            pl.BlockSpec((N_VEC, 1, N_NODES), lambda g: (0, 0, 0)),
        ],
        out_specs=pl.BlockSpec((None, BATCH, 1), lambda g: (g, 0, 0)),
    )
    return pl.pallas_call(
        _resnet_kernel,
        out_shape=jax.ShapeDtypeStruct((G, BATCH, 1), jnp.float32),
        grid_spec=grid_spec,
        compiler_params=pltpu.CompilerParams(dimension_semantics=("parallel",)),
    )(xc, params["wstack"], params["vstack"])


def resnet_forward(x, condition, params):
    """Forward pass.

    x, condition: (BATCH, IN_DIM) for a single forward (returns (BATCH, 1)), or
    (G, BATCH, IN_DIM) for G independent forwards (returns (G, BATCH, 1)).  Each group
    uses its own BatchNorm batch statistics, exactly like G separate PyTorch calls.
    """
    single = x.ndim == 2
    if single:
        x, condition = x[None], condition[None]
    out = _resnet_forward_grouped(x, condition, params)
    return out[0] if single else out


# ---------------- deterministic parameter construction (pre-packed, f32) ----------------
def init_params(key):
    """Packed f32 parameters:
      wstack: (L_TOTAL, N_NODES, N_NODES) -- layer 0 is the (2*IN_DIM -> N_NODES) weight
              zero-padded along its input rows; weights stored transposed w.r.t. nn.Linear
              so the kernel computes h @ W + b.
      vstack: (N_VEC, 1, N_NODES) -- biases, BN gammas, BN betas, final weight row,
              final bias broadcast across lanes."""
    keys = jax.random.split(key, 2 * (L_TOTAL + 1))

    def unif(k, shape, bound):
        return jax.random.uniform(k, shape, jnp.float32, -bound, bound)

    ws, bs = [], []
    # layer 0: (2*IN_DIM -> N_NODES), zero-padded to (N_NODES, N_NODES)
    s0 = 1.0 / math.sqrt(2 * IN_DIM)
    w0 = jnp.zeros((N_NODES, N_NODES), jnp.float32).at[:2 * IN_DIM, :].set(
        unif(keys[0], (2 * IN_DIM, N_NODES), s0))
    ws.append(w0)
    bs.append(unif(keys[1], (N_NODES,), s0))

    s = 1.0 / math.sqrt(N_NODES)
    for i in range(1, L_TOTAL):
        ws.append(unif(keys[2 * i], (N_NODES, N_NODES), s))
        bs.append(unif(keys[2 * i + 1], (N_NODES,), s))

    # final CLinear (n_nodes -> 1): init.uniform_(-0.001, 0.001) as in the PyTorch module
    wl = unif(keys[2 * L_TOTAL], (N_NODES,), 1e-3)
    bl = unif(keys[2 * L_TOTAL + 1], (), 1e-3)

    gammas = [jnp.ones((N_NODES,), jnp.float32) for _ in range(L_TOTAL)]   # BN affine init
    betas = [jnp.zeros((N_NODES,), jnp.float32) for _ in range(L_TOTAL)]
    vrows = bs + gammas + betas + [wl, jnp.full((N_NODES,), bl, jnp.float32)]

    return {
        "wstack": jnp.stack(ws, axis=0),                  # (L_TOTAL, N_NODES, N_NODES)
        "vstack": jnp.stack(vrows, axis=0)[:, None, :],   # (N_VEC, 1, N_NODES)
    }


# ---------------- plain-JAX reference (sanity check) ----------------
def resnet_reference(x, condition, params):
    W, V = params["wstack"], params["vstack"]

    def relu_bn(o, i):
        o = jnp.maximum(o, 0.0)
        if BATCH_NORM:
            mean = jnp.mean(o, axis=0, keepdims=True)
            var = jnp.mean(jnp.square(o - mean), axis=0, keepdims=True)  # biased, torch train mode
            o = (o - mean) / jnp.sqrt(var + BN_EPS)
            o = o * V[IDX_GAMMA0 + i, 0] + V[IDX_BETA0 + i, 0]
        return o

    def one_group(xg, cg):
        h = jnp.concatenate([xg, cg], axis=-1)
        h = relu_bn(h @ W[0, :2 * IN_DIM, :] + V[IDX_BIAS0, 0], 0)
        layer = 1
        for _ in range(N_BLOCKS):
            z = h
            for _ in range(HIDDEN_LAYER):
                z = relu_bn(z @ W[layer] + V[IDX_BIAS0 + layer, 0], layer)
                layer += 1
            h = h + z
        return h @ V[IDX_WL, 0][:, None] + V[IDX_BL, 0, 0]

    return jax.vmap(one_group)(x, condition)


if __name__ == "__main__":
    key = jax.random.PRNGKey(0)
    kx, kc, kp = jax.random.split(key, 3)

    x = jax.random.normal(kx, (NUM_GROUPS, BATCH, IN_DIM), jnp.float32)
    condition = jax.random.normal(kc, (NUM_GROUPS, BATCH, IN_DIM), jnp.float32)
    params = init_params(kp)

    out = jax.block_until_ready(resnet_forward(x, condition, params))
    assert out.shape == (NUM_GROUPS, BATCH, 1), out.shape
    assert bool(jnp.all(jnp.isfinite(out)))

    ref = resnet_reference(x, condition, params)
    assert jnp.allclose(out, ref, rtol=1e-4, atol=1e-4), float(jnp.max(jnp.abs(out - ref)))

    print("KERNEL_OK")
</pallas_src>

<mosaic_0001>
module attributes {stable_mosaic.version = 11 : i64} {
  func.func @_resnet_kernel(%arg0: i32, %arg1: memref<1x8x32xf32, #tpu.memory_space<vmem>>, %arg2: memref<7x32x32xf32, #tpu.memory_space<vmem>>, %arg3: memref<23x1x32xf32, #tpu.memory_space<vmem>>, %arg4: memref<1x8x1xf32, #tpu.memory_space<vmem>>) attributes {dimension_semantics = [#tpu.dimension_semantics<parallel>], iteration_bounds = array<i64: 16>, scalar_prefetch = 0 : i64, scratch_operands = 0 : i64, tpu.core_type = #tpu.core_type<tc>, window_params = [{transform_indices = @transform_0, window_bounds = array<i64: 1, 8, 32>}, {pipeline_mode = #tpu.pipeline_mode<synchronous>, transform_indices = @transform_1, window_bounds = array<i64: 7, 32, 32>}, {pipeline_mode = #tpu.pipeline_mode<synchronous>, transform_indices = @transform_2, window_bounds = array<i64: 23, 1, 32>}, {transform_indices = @transform_3, window_bounds = array<i64: 1, 8, 1>}]} {
    %c0 = arith.constant 0 : index
    %c0_0 = arith.constant 0 : index
    %c0_1 = arith.constant 0 : index
    %0 = vector.load %arg1[%c0, %c0_0, %c0_1] : memref<1x8x32xf32, #tpu.memory_space<vmem>>, vector<1x8x32xf32>
    %1 = vector.shape_cast %0 : vector<1x8x32xf32> to vector<8x32xf32>
    %c0_2 = arith.constant 0 : index
    %c0_3 = arith.constant 0 : index
    %c0_4 = arith.constant 0 : index
    %2 = vector.load %arg2[%c0_2, %c0_3, %c0_4] : memref<7x32x32xf32, #tpu.memory_space<vmem>>, vector<1x32x32xf32>
    %3 = vector.shape_cast %2 : vector<1x32x32xf32> to vector<32x32xf32>
    %cst = arith.constant dense<0.000000e+00> : vector<8x32xf32>
    %4 = tpu.matmul %1, %3, %cst {dimension_numbers = #tpu.dot_dimension_numbers<[1], [0], [0], [1], [0, 0, 1, 1], [], []>} : vector<8x32xf32>, vector<32x32xf32>, vector<8x32xf32> -> vector<8x32xf32>
    %c0_5 = arith.constant 0 : index
    %c0_6 = arith.constant 0 : index
    %c0_7 = arith.constant 0 : index
    %5 = vector.load %arg3[%c0_5, %c0_6, %c0_7] : memref<23x1x32xf32, #tpu.memory_space<vmem>>, vector<1x1x32xf32>
    %6 = vector.shape_cast %5 : vector<1x1x32xf32> to vector<1x32xf32>
    %7 = vector.broadcast %6 : vector<1x32xf32> to vector<8x32xf32>
    %8 = arith.addf %4, %7 : vector<8x32xf32>
    %cst_8 = arith.constant 0.000000e+00 : f32
    %9 = vector.broadcast %cst_8 : f32 to vector<8x32xf32>
    %10 = arith.maximumf %8, %9 : vector<8x32xf32>
    %11 = arith.mulf %10, %10 : vector<8x32xf32>
    %12 = tpu.concatenate %10, %11 in 1 : vector<8x32xf32>, vector<8x32xf32> -> vector<8x64xf32>
    %cst_9 = arith.constant dense<0.000000e+00> : vector<64xf32>
    %13 = vector.multi_reduction <add>, %12, %cst_9 [0] : vector<8x64xf32> to vector<64xf32>
    %14 = vector.shape_cast %13 : vector<64xf32> to vector<1x64xf32>
    %cst_10 = arith.constant 1.250000e-01 : f32
    %15 = vector.broadcast %cst_10 : f32 to vector<1x64xf32>
    %16 = arith.mulf %14, %15 : vector<1x64xf32>
    %17 = vector.extract_strided_slice %16 {offsets = [0, 0], sizes = [1, 32], strides = [1, 1]} : vector<1x64xf32> to vector<1x32xf32>
    %18 = vector.extract_strided_slice %16 {offsets = [0, 32], sizes = [1, 32], strides = [1, 1]} : vector<1x64xf32> to vector<1x32xf32>
    %19 = arith.mulf %17, %17 : vector<1x32xf32>
    %20 = arith.subf %18, %19 : vector<1x32xf32>
    %cst_11 = arith.constant 0.000000e+00 : f32
    %21 = vector.broadcast %cst_11 : f32 to vector<1x32xf32>
    %22 = arith.maximumf %20, %21 : vector<1x32xf32>
    %23 = vector.broadcast %17 : vector<1x32xf32> to vector<8x32xf32>
    %24 = arith.subf %10, %23 : vector<8x32xf32>
    %cst_12 = arith.constant 9.99999974E-6 : f32
    %25 = vector.broadcast %cst_12 : f32 to vector<1x32xf32>
    %26 = arith.addf %22, %25 : vector<1x32xf32>
    %27 = math.rsqrt %26 : vector<1x32xf32>
    %28 = vector.broadcast %27 : vector<1x32xf32> to vector<8x32xf32>
    %29 = arith.mulf %24, %28 : vector<8x32xf32>
    %c7 = arith.constant 7 : index
    %c0_13 = arith.constant 0 : index
    %c0_14 = arith.constant 0 : index
    %30 = vector.load %arg3[%c7, %c0_13, %c0_14] : memref<23x1x32xf32, #tpu.memory_space<vmem>>, vector<1x1x32xf32>
    %31 = vector.shape_cast %30 : vector<1x1x32xf32> to vector<1x32xf32>
    %32 = vector.broadcast %31 : vector<1x32xf32> to vector<8x32xf32>
    %33 = arith.mulf %29, %32 : vector<8x32xf32>
    %c14 = arith.constant 14 : index
    %c0_15 = arith.constant 0 : index
    %c0_16 = arith.constant 0 : index
    %34 = vector.load %arg3[%c14, %c0_15, %c0_16] : memref<23x1x32xf32, #tpu.memory_space<vmem>>, vector<1x1x32xf32>
    %35 = vector.shape_cast %34 : vector<1x1x32xf32> to vector<1x32xf32>
    %36 = vector.broadcast %35 : vector<1x32xf32> to vector<8x32xf32>
    %37 = arith.addf %33, %36 : vector<8x32xf32>
    %c1 = arith.constant 1 : index
    %c0_17 = arith.constant 0 : index
    %c0_18 = arith.constant 0 : index
    %38 = vector.load %arg2[%c1, %c0_17, %c0_18] : memref<7x32x32xf32, #tpu.memory_space<vmem>>, vector<1x32x32xf32>
    %39 = vector.shape_cast %38 : vector<1x32x32xf32> to vector<32x32xf32>
    %cst_19 = arith.constant dense<0.000000e+00> : vector<8x32xf32>
    %40 = tpu.matmul %37, %39, %cst_19 {dimension_numbers = #tpu.dot_dimension_numbers<[1], [0], [0], [1], [0, 0, 1, 1], [], []>} : vector<8x32xf32>, vector<32x32xf32>, vector<8x32xf32> -> vector<8x32xf32>
    %c1_20 = arith.constant 1 : index
    %c0_21 = arith.constant 0 : index
    %c0_22 = arith.constant 0 : index
    %41 = vector.load %arg3[%c1_20, %c0_21, %c0_22] : memref<23x1x32xf32, #tpu.memory_space<vmem>>, vector<1x1x32xf32>
    %42 = vector.shape_cast %41 : vector<1x1x32xf32> to vector<1x32xf32>
    %43 = vector.broadcast %42 : vector<1x32xf32> to vector<8x32xf32>
    %44 = arith.addf %40, %43 : vector<8x32xf32>
    %cst_23 = arith.constant 0.000000e+00 : f32
    %45 = vector.broadcast %cst_23 : f32 to vector<8x32xf32>
    %46 = arith.maximumf %44, %45 : vector<8x32xf32>
    %47 = arith.mulf %46, %46 : vector<8x32xf32>
    %48 = tpu.concatenate %46, %47 in 1 : vector<8x32xf32>, vector<8x32xf32> -> vector<8x64xf32>
    %cst_24 = arith.constant dense<0.000000e+00> : vector<64xf32>
    %49 = vector.multi_reduction <add>, %48, %cst_24 [0] : vector<8x64xf32> to vector<64xf32>
    %50 = vector.shape_cast %49 : vector<64xf32> to vector<1x64xf32>
    %cst_25 = arith.constant 1.250000e-01 : f32
    %51 = vector.broadcast %cst_25 : f32 to vector<1x64xf32>
    %52 = arith.mulf %50, %51 : vector<1x64xf32>
    %53 = vector.extract_strided_slice %52 {offsets = [0, 0], sizes = [1, 32], strides = [1, 1]} : vector<1x64xf32> to vector<1x32xf32>
    %54 = vector.extract_strided_slice %52 {offsets = [0, 32], sizes = [1, 32], strides = [1, 1]} : vector<1x64xf32> to vector<1x32xf32>
    %55 = arith.mulf %53, %53 : vector<1x32xf32>
    %56 = arith.subf %54, %55 : vector<1x32xf32>
    %cst_26 = arith.constant 0.000000e+00 : f32
    %57 = vector.broadcast %cst_26 : f32 to vector<1x32xf32>
    %58 = arith.maximumf %56, %57 : vector<1x32xf32>
    %59 = vector.broadcast %53 : vector<1x32xf32> to vector<8x32xf32>
    %60 = arith.subf %46, %59 : vector<8x32xf32>
    %cst_27 = arith.constant 9.99999974E-6 : f32
    %61 = vector.broadcast %cst_27 : f32 to vector<1x32xf32>
    %62 = arith.addf %58, %61 : vector<1x32xf32>
    %63 = math.rsqrt %62 : vector<1x32xf32>
    %64 = vector.broadcast %63 : vector<1x32xf32> to vector<8x32xf32>
    %65 = arith.mulf %60, %64 : vector<8x32xf32>
    %c8 = arith.constant 8 : index
    %c0_28 = arith.constant 0 : index
    %c0_29 = arith.constant 0 : index
    %66 = vector.load %arg3[%c8, %c0_28, %c0_29] : memref<23x1x32xf32, #tpu.memory_space<vmem>>, vector<1x1x32xf32>
    %67 = vector.shape_cast %66 : vector<1x1x32xf32> to vector<1x32xf32>
    %68 = vector.broadcast %67 : vector<1x32xf32> to vector<8x32xf32>
    %69 = arith.mulf %65, %68 : vector<8x32xf32>
    %c15 = arith.constant 15 : index
    %c0_30 = arith.constant 0 : index
    %c0_31 = arith.constant 0 : index
    %70 = vector.load %arg3[%c15, %c0_30, %c0_31] : memref<23x1x32xf32, #tpu.memory_space<vmem>>, vector<1x1x32xf32>
    %71 = vector.shape_cast %70 : vector<1x1x32xf32> to vector<1x32xf32>
    %72 = vector.broadcast %71 : vector<1x32xf32> to vector<8x32xf32>
    %73 = arith.addf %69, %72 : vector<8x32xf32>
    %c2 = arith.constant 2 : index
    %c0_32 = arith.constant 0 : index
    %c0_33 = arith.constant 0 : index
    %74 = vector.load %arg2[%c2, %c0_32, %c0_33] : memref<7x32x32xf32, #tpu.memory_space<vmem>>, vector<1x32x32xf32>
    %75 = vector.shape_cast %74 : vector<1x32x32xf32> to vector<32x32xf32>
    %cst_34 = arith.constant dense<0.000000e+00> : vector<8x32xf32>
    %76 = tpu.matmul %73, %75, %cst_34 {dimension_numbers = #tpu.dot_dimension_numbers<[1], [0], [0], [1], [0, 0, 1, 1], [], []>} : vector<8x32xf32>, vector<32x32xf32>, vector<8x32xf32> -> vector<8x32xf32>
    %c2_35 = arith.constant 2 : index
    %c0_36 = arith.constant 0 : index
    %c0_37 = arith.constant 0 : index
    %77 = vector.load %arg3[%c2_35, %c0_36, %c0_37] : memref<23x1x32xf32, #tpu.memory_space<vmem>>, vector<1x1x32xf32>
    %78 = vector.shape_cast %77 : vector<1x1x32xf32> to vector<1x32xf32>
    %79 = vector.broadcast %78 : vector<1x32xf32> to vector<8x32xf32>
    %80 = arith.addf %76, %79 : vector<8x32xf32>
    %cst_38 = arith.constant 0.000000e+00 : f32
    %81 = vector.broadcast %cst_38 : f32 to vector<8x32xf32>
    %82 = arith.maximumf %80, %81 : vector<8x32xf32>
    %83 = arith.mulf %82, %82 : vector<8x32xf32>
    %84 = tpu.concatenate %82, %83 in 1 : vector<8x32xf32>, vector<8x32xf32> -> vector<8x64xf32>
    %cst_39 = arith.constant dense<0.000000e+00> : vector<64xf32>
    %85 = vector.multi_reduction <add>, %84, %cst_39 [0] : vector<8x64xf32> to vector<64xf32>
    %86 = vector.shape_cast %85 : vector<64xf32> to vector<1x64xf32>
    %cst_40 = arith.constant 1.250000e-01 : f32
    %87 = vector.broadcast %cst_40 : f32 to vector<1x64xf32>
    %88 = arith.mulf %86, %87 : vector<1x64xf32>
    %89 = vector.extract_strided_slice %88 {offsets = [0, 0], sizes = [1, 32], strides = [1, 1]} : vector<1x64xf32> to vector<1x32xf32>
    %90 = vector.extract_strided_slice %88 {offsets = [0, 32], sizes = [1, 32], strides = [1, 1]} : vector<1x64xf32> to vector<1x32xf32>
    %91 = arith.mulf %89, %89 : vector<1x32xf32>
    %92 = arith.subf %90, %91 : vector<1x32xf32>
    %cst_41 = arith.constant 0.000000e+00 : f32
    %93 = vector.broadcast %cst_41 : f32 to vector<1x32xf32>
    %94 = arith.maximumf %92, %93 : vector<1x32xf32>
    %95 = vector.broadcast %89 : vector<1x32xf32> to vector<8x32xf32>
    %96 = arith.subf %82, %95 : vector<8x32xf32>
    %cst_42 = arith.constant 9.99999974E-6 : f32
    %97 = vector.broadcast %cst_42 : f32 to vector<1x32xf32>
    %98 = arith.addf %94, %97 : vector<1x32xf32>
    %99 = math.rsqrt %98 : vector<1x32xf32>
    %100 = vector.broadcast %99 : vector<1x32xf32> to vector<8x32xf32>
    %101 = arith.mulf %96, %100 : vector<8x32xf32>
    %c9 = arith.constant 9 : index
    %c0_43 = arith.constant 0 : index
    %c0_44 = arith.constant 0 : index
    %102 = vector.load %arg3[%c9, %c0_43, %c0_44] : memref<23x1x32xf32, #tpu.memory_space<vmem>>, vector<1x1x32xf32>
    %103 = vector.shape_cast %102 : vector<1x1x32xf32> to vector<1x32xf32>
    %104 = vector.broadcast %103 : vector<1x32xf32> to vector<8x32xf32>
    %105 = arith.mulf %101, %104 : vector<8x32xf32>
    %c16 = arith.constant 16 : index
    %c0_45 = arith.constant 0 : index
    %c0_46 = arith.constant 0 : index
    %106 = vector.load %arg3[%c16, %c0_45, %c0_46] : memref<23x1x32xf32, #tpu.memory_space<vmem>>, vector<1x1x32xf32>
    %107 = vector.shape_cast %106 : vector<1x1x32xf32> to vector<1x32xf32>
    %108 = vector.broadcast %107 : vector<1x32xf32> to vector<8x32xf32>
    %109 = arith.addf %105, %108 : vector<8x32xf32>
    %c3 = arith.constant 3 : index
    %c0_47 = arith.constant 0 : index
    %c0_48 = arith.constant 0 : index
    %110 = vector.load %arg2[%c3, %c0_47, %c0_48] : memref<7x32x32xf32, #tpu.memory_space<vmem>>, vector<1x32x32xf32>
    %111 = vector.shape_cast %110 : vector<1x32x32xf32> to vector<32x32xf32>
    %cst_49 = arith.constant dense<0.000000e+00> : vector<8x32xf32>
    %112 = tpu.matmul %109, %111, %cst_49 {dimension_numbers = #tpu.dot_dimension_numbers<[1], [0], [0], [1], [0, 0, 1, 1], [], []>} : vector<8x32xf32>, vector<32x32xf32>, vector<8x32xf32> -> vector<8x32xf32>
    %c3_50 = arith.constant 3 : index
    %c0_51 = arith.constant 0 : index
    %c0_52 = arith.constant 0 : index
    %113 = vector.load %arg3[%c3_50, %c0_51, %c0_52] : memref<23x1x32xf32, #tpu.memory_space<vmem>>, vector<1x1x32xf32>
    %114 = vector.shape_cast %113 : vector<1x1x32xf32> to vector<1x32xf32>
    %115 = vector.broadcast %114 : vector<1x32xf32> to vector<8x32xf32>
    %116 = arith.addf %112, %115 : vector<8x32xf32>
    %cst_53 = arith.constant 0.000000e+00 : f32
    %117 = vector.broadcast %cst_53 : f32 to vector<8x32xf32>
    %118 = arith.maximumf %116, %117 : vector<8x32xf32>
    %119 = arith.mulf %118, %118 : vector<8x32xf32>
    %120 = tpu.concatenate %118, %119 in 1 : vector<8x32xf32>, vector<8x32xf32> -> vector<8x64xf32>
    %cst_54 = arith.constant dense<0.000000e+00> : vector<64xf32>
    %121 = vector.multi_reduction <add>, %120, %cst_54 [0] : vector<8x64xf32> to vector<64xf32>
    %122 = vector.shape_cast %121 : vector<64xf32> to vector<1x64xf32>
    %cst_55 = arith.constant 1.250000e-01 : f32
    %123 = vector.broadcast %cst_55 : f32 to vector<1x64xf32>
    %124 = arith.mulf %122, %123 : vector<1x64xf32>
    %125 = vector.extract_strided_slice %124 {offsets = [0, 0], sizes = [1, 32], strides = [1, 1]} : vector<1x64xf32> to vector<1x32xf32>
    %126 = vector.extract_strided_slice %124 {offsets = [0, 32], sizes = [1, 32], strides = [1, 1]} : vector<1x64xf32> to vector<1x32xf32>
    %127 = arith.mulf %125, %125 : vector<1x32xf32>
    %128 = arith.subf %126, %127 : vector<1x32xf32>
    %cst_56 = arith.constant 0.000000e+00 : f32
    %129 = vector.broadcast %cst_56 : f32 to vector<1x32xf32>
    %130 = arith.maximumf %128, %129 : vector<1x32xf32>
    %131 = vector.broadcast %125 : vector<1x32xf32> to vector<8x32xf32>
    %132 = arith.subf %118, %131 : vector<8x32xf32>
    %cst_57 = arith.constant 9.99999974E-6 : f32
    %133 = vector.broadcast %cst_57 : f32 to vector<1x32xf32>
    %134 = arith.addf %130, %133 : vector<1x32xf32>
    %135 = math.rsqrt %134 : vector<1x32xf32>
    %136 = vector.broadcast %135 : vector<1x32xf32> to vector<8x32xf32>
    %137 = arith.mulf %132, %136 : vector<8x32xf32>
    %c10 = arith.constant 10 : index
    %c0_58 = arith.constant 0 : index
    %c0_59 = arith.constant 0 : index
    %138 = vector.load %arg3[%c10, %c0_58, %c0_59] : memref<23x1x32xf32, #tpu.memory_space<vmem>>, vector<1x1x32xf32>
    %139 = vector.shape_cast %138 : vector<1x1x32xf32> to vector<1x32xf32>
    %140 = vector.broadcast %139 : vector<1x32xf32> to vector<8x32xf32>
    %141 = arith.mulf %137, %140 : vector<8x32xf32>
    %c17 = arith.constant 17 : index
    %c0_60 = arith.constant 0 : index
    %c0_61 = arith.constant 0 : index
    %142 = vector.load %arg3[%c17, %c0_60, %c0_61] : memref<23x1x32xf32, #tpu.memory_space<vmem>>, vector<1x1x32xf32>
    %143 = vector.shape_cast %142 : vector<1x1x32xf32> to vector<1x32xf32>
    %144 = vector.broadcast %143 : vector<1x32xf32> to vector<8x32xf32>
    %145 = arith.addf %141, %144 : vector<8x32xf32>
    %146 = arith.addf %37, %145 : vector<8x32xf32>
    %c4 = arith.constant 4 : index
    %c0_62 = arith.constant 0 : index
    %c0_63 = arith.constant 0 : index
    %147 = vector.load %arg2[%c4, %c0_62, %c0_63] : memref<7x32x32xf32, #tpu.memory_space<vmem>>, vector<1x32x32xf32>
    %148 = vector.shape_cast %147 : vector<1x32x32xf32> to vector<32x32xf32>
    %cst_64 = arith.constant dense<0.000000e+00> : vector<8x32xf32>
    %149 = tpu.matmul %146, %148, %cst_64 {dimension_numbers = #tpu.dot_dimension_numbers<[1], [0], [0], [1], [0, 0, 1, 1], [], []>} : vector<8x32xf32>, vector<32x32xf32>, vector<8x32xf32> -> vector<8x32xf32>
    %c4_65 = arith.constant 4 : index
    %c0_66 = arith.constant 0 : index
    %c0_67 = arith.constant 0 : index
    %150 = vector.load %arg3[%c4_65, %c0_66, %c0_67] : memref<23x1x32xf32, #tpu.memory_space<vmem>>, vector<1x1x32xf32>
    %151 = vector.shape_cast %150 : vector<1x1x32xf32> to vector<1x32xf32>
    %152 = vector.broadcast %151 : vector<1x32xf32> to vector<8x32xf32>
    %153 = arith.addf %149, %152 : vector<8x32xf32>
    %cst_68 = arith.constant 0.000000e+00 : f32
    %154 = vector.broadcast %cst_68 : f32 to vector<8x32xf32>
    %155 = arith.maximumf %153, %154 : vector<8x32xf32>
    %156 = arith.mulf %155, %155 : vector<8x32xf32>
    %157 = tpu.concatenate %155, %156 in 1 : vector<8x32xf32>, vector<8x32xf32> -> vector<8x64xf32>
    %cst_69 = arith.constant dense<0.000000e+00> : vector<64xf32>
    %158 = vector.multi_reduction <add>, %157, %cst_69 [0] : vector<8x64xf32> to vector<64xf32>
    %159 = vector.shape_cast %158 : vector<64xf32> to vector<1x64xf32>
    %cst_70 = arith.constant 1.250000e-01 : f32
    %160 = vector.broadcast %cst_70 : f32 to vector<1x64xf32>
    %161 = arith.mulf %159, %160 : vector<1x64xf32>
    %162 = vector.extract_strided_slice %161 {offsets = [0, 0], sizes = [1, 32], strides = [1, 1]} : vector<1x64xf32> to vector<1x32xf32>
    %163 = vector.extract_strided_slice %161 {offsets = [0, 32], sizes = [1, 32], strides = [1, 1]} : vector<1x64xf32> to vector<1x32xf32>
    %164 = arith.mulf %162, %162 : vector<1x32xf32>
    %165 = arith.subf %163, %164 : vector<1x32xf32>
    %cst_71 = arith.constant 0.000000e+00 : f32
    %166 = vector.broadcast %cst_71 : f32 to vector<1x32xf32>
    %167 = arith.maximumf %165, %166 : vector<1x32xf32>
    %168 = vector.broadcast %162 : vector<1x32xf32> to vector<8x32xf32>
    %169 = arith.subf %155, %168 : vector<8x32xf32>
    %cst_72 = arith.constant 9.99999974E-6 : f32
    %170 = vector.broadcast %cst_72 : f32 to vector<1x32xf32>
    %171 = arith.addf %167, %170 : vector<1x32xf32>
    %172 = math.rsqrt %171 : vector<1x32xf32>
    %173 = vector.broadcast %172 : vector<1x32xf32> to vector<8x32xf32>
    %174 = arith.mulf %169, %173 : vector<8x32xf32>
    %c11 = arith.constant 11 : index
    %c0_73 = arith.constant 0 : index
    %c0_74 = arith.constant 0 : index
    %175 = vector.load %arg3[%c11, %c0_73, %c0_74] : memref<23x1x32xf32, #tpu.memory_space<vmem>>, vector<1x1x32xf32>
    %176 = vector.shape_cast %175 : vector<1x1x32xf32> to vector<1x32xf32>
    %177 = vector.broadcast %176 : vector<1x32xf32> to vector<8x32xf32>
    %178 = arith.mulf %174, %177 : vector<8x32xf32>
    %c18 = arith.constant 18 : index
    %c0_75 = arith.constant 0 : index
    %c0_76 = arith.constant 0 : index
    %179 = vector.load %arg3[%c18, %c0_75, %c0_76] : memref<23x1x32xf32, #tpu.memory_space<vmem>>, vector<1x1x32xf32>
    %180 = vector.shape_cast %179 : vector<1x1x32xf32> to vector<1x32xf32>
    %181 = vector.broadcast %180 : vector<1x32xf32> to vector<8x32xf32>
    %182 = arith.addf %178, %181 : vector<8x32xf32>
    %c5 = arith.constant 5 : index
    %c0_77 = arith.constant 0 : index
    %c0_78 = arith.constant 0 : index
    %183 = vector.load %arg2[%c5, %c0_77, %c0_78] : memref<7x32x32xf32, #tpu.memory_space<vmem>>, vector<1x32x32xf32>
    %184 = vector.shape_cast %183 : vector<1x32x32xf32> to vector<32x32xf32>
    %cst_79 = arith.constant dense<0.000000e+00> : vector<8x32xf32>
    %185 = tpu.matmul %182, %184, %cst_79 {dimension_numbers = #tpu.dot_dimension_numbers<[1], [0], [0], [1], [0, 0, 1, 1], [], []>} : vector<8x32xf32>, vector<32x32xf32>, vector<8x32xf32> -> vector<8x32xf32>
    %c5_80 = arith.constant 5 : index
    %c0_81 = arith.constant 0 : index
    %c0_82 = arith.constant 0 : index
    %186 = vector.load %arg3[%c5_80, %c0_81, %c0_82] : memref<23x1x32xf32, #tpu.memory_space<vmem>>, vector<1x1x32xf32>
    %187 = vector.shape_cast %186 : vector<1x1x32xf32> to vector<1x32xf32>
    %188 = vector.broadcast %187 : vector<1x32xf32> to vector<8x32xf32>
    %189 = arith.addf %185, %188 : vector<8x32xf32>
    %cst_83 = arith.constant 0.000000e+00 : f32
    %190 = vector.broadcast %cst_83 : f32 to vector<8x32xf32>
    %191 = arith.maximumf %189, %190 : vector<8x32xf32>
    %192 = arith.mulf %191, %191 : vector<8x32xf32>
    %193 = tpu.concatenate %191, %192 in 1 : vector<8x32xf32>, vector<8x32xf32> -> vector<8x64xf32>
    %cst_84 = arith.constant dense<0.000000e+00> : vector<64xf32>
    %194 = vector.multi_reduction <add>, %193, %cst_84 [0] : vector<8x64xf32> to vector<64xf32>
    %195 = vector.shape_cast %194 : vector<64xf32> to vector<1x64xf32>
    %cst_85 = arith.constant 1.250000e-01 : f32
    %196 = vector.broadcast %cst_85 : f32 to vector<1x64xf32>
    %197 = arith.mulf %195, %196 : vector<1x64xf32>
    %198 = vector.extract_strided_slice %197 {offsets = [0, 0], sizes = [1, 32], strides = [1, 1]} : vector<1x64xf32> to vector<1x32xf32>
    %199 = vector.extract_strided_slice %197 {offsets = [0, 32], sizes = [1, 32], strides = [1, 1]} : vector<1x64xf32> to vector<1x32xf32>
    %200 = arith.mulf %198, %198 : vector<1x32xf32>
    %201 = arith.subf %199, %200 : vector<1x32xf32>
    %cst_86 = arith.constant 0.000000e+00 : f32
    %202 = vector.broadcast %cst_86 : f32 to vector<1x32xf32>
    %203 = arith.maximumf %201, %202 : vector<1x32xf32>
    %204 = vector.broadcast %198 : vector<1x32xf32> to vector<8x32xf32>
    %205 = arith.subf %191, %204 : vector<8x32xf32>
    %cst_87 = arith.constant 9.99999974E-6 : f32
    %206 = vector.broadcast %cst_87 : f32 to vector<1x32xf32>
    %207 = arith.addf %203, %206 : vector<1x32xf32>
    %208 = math.rsqrt %207 : vector<1x32xf32>
    %209 = vector.broadcast %208 : vector<1x32xf32> to vector<8x32xf32>
    %210 = arith.mulf %205, %209 : vector<8x32xf32>
    %c12 = arith.constant 12 : index
    %c0_88 = arith.constant 0 : index
    %c0_89 = arith.constant 0 : index
    %211 = vector.load %arg3[%c12, %c0_88, %c0_89] : memref<23x1x32xf32, #tpu.memory_space<vmem>>, vector<1x1x32xf32>
    %212 = vector.shape_cast %211 : vector<1x1x32xf32> to vector<1x32xf32>
    %213 = vector.broadcast %212 : vector<1x32xf32> to vector<8x32xf32>
    %214 = arith.mulf %210, %213 : vector<8x32xf32>
    %c19 = arith.constant 19 : index
    %c0_90 = arith.constant 0 : index
    %c0_91 = arith.constant 0 : index
    %215 = vector.load %arg3[%c19, %c0_90, %c0_91] : memref<23x1x32xf32, #tpu.memory_space<vmem>>, vector<1x1x32xf32>
    %216 = vector.shape_cast %215 : vector<1x1x32xf32> to vector<1x32xf32>
    %217 = vector.broadcast %216 : vector<1x32xf32> to vector<8x32xf32>
    %218 = arith.addf %214, %217 : vector<8x32xf32>
    %c6 = arith.constant 6 : index
    %c0_92 = arith.constant 0 : index
    %c0_93 = arith.constant 0 : index
    %219 = vector.load %arg2[%c6, %c0_92, %c0_93] : memref<7x32x32xf32, #tpu.memory_space<vmem>>, vector<1x32x32xf32>
    %220 = vector.shape_cast %219 : vector<1x32x32xf32> to vector<32x32xf32>
    %cst_94 = arith.constant dense<0.000000e+00> : vector<8x32xf32>
    %221 = tpu.matmul %218, %220, %cst_94 {dimension_numbers = #tpu.dot_dimension_numbers<[1], [0], [0], [1], [0, 0, 1, 1], [], []>} : vector<8x32xf32>, vector<32x32xf32>, vector<8x32xf32> -> vector<8x32xf32>
    %c6_95 = arith.constant 6 : index
    %c0_96 = arith.constant 0 : index
    %c0_97 = arith.constant 0 : index
    %222 = vector.load %arg3[%c6_95, %c0_96, %c0_97] : memref<23x1x32xf32, #tpu.memory_space<vmem>>, vector<1x1x32xf32>
    %223 = vector.shape_cast %222 : vector<1x1x32xf32> to vector<1x32xf32>
    %224 = vector.broadcast %223 : vector<1x32xf32> to vector<8x32xf32>
    %225 = arith.addf %221, %224 : vector<8x32xf32>
    %cst_98 = arith.constant 0.000000e+00 : f32
    %226 = vector.broadcast %cst_98 : f32 to vector<8x32xf32>
    %227 = arith.maximumf %225, %226 : vector<8x32xf32>
    %228 = arith.mulf %227, %227 : vector<8x32xf32>
    %229 = tpu.concatenate %227, %228 in 1 : vector<8x32xf32>, vector<8x32xf32> -> vector<8x64xf32>
    %cst_99 = arith.constant dense<0.000000e+00> : vector<64xf32>
    %230 = vector.multi_reduction <add>, %229, %cst_99 [0] : vector<8x64xf32> to vector<64xf32>
    %231 = vector.shape_cast %230 : vector<64xf32> to vector<1x64xf32>
    %cst_100 = arith.constant 1.250000e-01 : f32
    %232 = vector.broadcast %cst_100 : f32 to vector<1x64xf32>
    %233 = arith.mulf %231, %232 : vector<1x64xf32>
    %234 = vector.extract_strided_slice %233 {offsets = [0, 0], sizes = [1, 32], strides = [1, 1]} : vector<1x64xf32> to vector<1x32xf32>
    %235 = vector.extract_strided_slice %233 {offsets = [0, 32], sizes = [1, 32], strides = [1, 1]} : vector<1x64xf32> to vector<1x32xf32>
    %236 = arith.mulf %234, %234 : vector<1x32xf32>
    %237 = arith.subf %235, %236 : vector<1x32xf32>
    %cst_101 = arith.constant 0.000000e+00 : f32
    %238 = vector.broadcast %cst_101 : f32 to vector<1x32xf32>
    %239 = arith.maximumf %237, %238 : vector<1x32xf32>
    %240 = vector.broadcast %234 : vector<1x32xf32> to vector<8x32xf32>
    %241 = arith.subf %227, %240 : vector<8x32xf32>
    %cst_102 = arith.constant 9.99999974E-6 : f32
    %242 = vector.broadcast %cst_102 : f32 to vector<1x32xf32>
    %243 = arith.addf %239, %242 : vector<1x32xf32>
    %244 = math.rsqrt %243 : vector<1x32xf32>
    %245 = vector.broadcast %244 : vector<1x32xf32> to vector<8x32xf32>
    %246 = arith.mulf %241, %245 : vector<8x32xf32>
    %c13 = arith.constant 13 : index
    %c0_103 = arith.constant 0 : index
    %c0_104 = arith.constant 0 : index
    %247 = vector.load %arg3[%c13, %c0_103, %c0_104] : memref<23x1x32xf32, #tpu.memory_space<vmem>>, vector<1x1x32xf32>
    %248 = vector.shape_cast %247 : vector<1x1x32xf32> to vector<1x32xf32>
    %249 = vector.broadcast %248 : vector<1x32xf32> to vector<8x32xf32>
    %250 = arith.mulf %246, %249 : vector<8x32xf32>
    %c20 = arith.constant 20 : index
    %c0_105 = arith.constant 0 : index
    %c0_106 = arith.constant 0 : index
    %251 = vector.load %arg3[%c20, %c0_105, %c0_106] : memref<23x1x32xf32, #tpu.memory_space<vmem>>, vector<1x1x32xf32>
    %252 = vector.shape_cast %251 : vector<1x1x32xf32> to vector<1x32xf32>
    %253 = vector.broadcast %252 : vector<1x32xf32> to vector<8x32xf32>
    %254 = arith.addf %250, %253 : vector<8x32xf32>
    %255 = arith.addf %146, %254 : vector<8x32xf32>
    %c21 = arith.constant 21 : index
    %c0_107 = arith.constant 0 : index
    %c0_108 = arith.constant 0 : index
    %256 = vector.load %arg3[%c21, %c0_107, %c0_108] : memref<23x1x32xf32, #tpu.memory_space<vmem>>, vector<1x1x32xf32>
    %257 = vector.shape_cast %256 : vector<1x1x32xf32> to vector<1x32xf32>
    %c22 = arith.constant 22 : index
    %c0_109 = arith.constant 0 : index
    %c0_110 = arith.constant 0 : index
    %258 = vector.load %arg3[%c22, %c0_109, %c0_110] : memref<23x1x32xf32, #tpu.memory_space<vmem>>, vector<1x1x32xf32>
    %259 = vector.shape_cast %258 : vector<1x1x32xf32> to vector<1x32xf32>
    %260 = vector.extract_strided_slice %259 {offsets = [0, 0], sizes = [1, 1], strides = [1, 1]} : vector<1x32xf32> to vector<1x1xf32>
    %261 = vector.broadcast %257 : vector<1x32xf32> to vector<8x32xf32>
    %262 = arith.mulf %255, %261 : vector<8x32xf32>
    %cst_111 = arith.constant dense<0.000000e+00> : vector<8xf32>
    %263 = vector.multi_reduction <add>, %262, %cst_111 [1] : vector<8x32xf32> to vector<8xf32>
    %264 = vector.shape_cast %263 : vector<8xf32> to vector<8x1xf32>
    %265 = vector.broadcast %260 : vector<1x1xf32> to vector<8x1xf32>
    %266 = arith.addf %264, %265 : vector<8x1xf32>
    %c0_112 = arith.constant 0 : index
    %c0_113 = arith.constant 0 : index
    %c0_114 = arith.constant 0 : index
    %267 = vector.load %arg4[%c0_112, %c0_113, %c0_114] : memref<1x8x1xf32, #tpu.memory_space<vmem>>, vector<1x8x1xf32>
    %268 = vector.shape_cast %267 : vector<1x8x1xf32> to vector<8x1xf32>
    %269 = vector.shape_cast %266 : vector<8x1xf32> to vector<1x8x1xf32>
    tpu.vector_store %arg4[%c0_112, %c0_113, %c0_114], %269 {strides = array<i32>} : memref<1x8x1xf32, #tpu.memory_space<vmem>>, vector<1x8x1xf32>,
    return
  }
  func.func @transform_0(%arg0: i32) -> (i32, i32, i32) {
    %c0_i32 = arith.constant 0 : i32
    %c0_i32_0 = arith.constant 0 : i32
    %c0_i32_1 = arith.constant 0 : i32
    return %arg0, %c0_i32, %c0_i32_0 : i32, i32, i32
  }
  func.func @transform_1(%arg0: i32) -> (i32, i32, i32) {
    %c0_i32 = arith.constant 0 : i32
    %c0_i32_0 = arith.constant 0 : i32
    %c0_i32_1 = arith.constant 0 : i32
    %c0_i32_2 = arith.constant 0 : i32
    return %c0_i32, %c0_i32_0, %c0_i32_1 : i32, i32, i32
  }
  func.func @transform_2(%arg0: i32) -> (i32, i32, i32) {
    %c0_i32 = arith.constant 0 : i32
    %c0_i32_0 = arith.constant 0 : i32
    %c0_i32_1 = arith.constant 0 : i32
    %c0_i32_2 = arith.constant 0 : i32
    return %c0_i32, %c0_i32_0, %c0_i32_1 : i32, i32, i32
  }
  func.func @transform_3(%arg0: i32) -> (i32, i32, i32) {
    %c0_i32 = arith.constant 0 : i32
    %c0_i32_0 = arith.constant 0 : i32
    %c0_i32_1 = arith.constant 0 : i32
    return %arg0, %c0_i32, %c0_i32_0 : i32, i32, i32
  }
}

</mosaic_0001>

<bundles_post_ra>
// kernel: _resnet_forward_grouped.1
= control target key start
LH: loop header
LB: loop body
LE: loop exit
PB: predicated region body
PF: predicated region fallthrough
CT: control target
= control target key end

     0   :  { %s1510_s12 = smov 0   ;;  %s1775_s0 = inlined_call_operand.vmem [shape: f32[16,8,32], index: 0, kind: input, shape index: {}]   ;;  %s1776_s1 = inlined_call_operand.vmem [shape: f32[7,32,32], index: 1, kind: input, shape index: {}]   ;;  %s1777_s2 = inlined_call_operand.vmem [shape: f32[23,1,32], index: 2, kind: input, shape index: {}]   ;;  %s1778_s3 = inlined_call_operand.vmem [shape: f32[16,8,1], index: 3, kind: output, shape index: {}]  }
   0x1 LB: > { %s1211_s13 = sadd.s32 4294967295, %s1483_s12   ;;  %p1215_p0 = scmp.ge.s32.totalorder %s1483_s12, 1  ;;  %s1483_s12 = sphi %s1510_s12, %s13_s12  }
   0x2   : > { %p136_p1 = scmp.lt.s32.totalorder %s1483_s12, 17 }
   0x4   : > { %p137_p2 = pnand %p1215_p0, %p136_p1 }
   0x5   : > { %v167_v0 = vld [vmem:[%s1776_s1] sm:$0xff] (!%p137_p2)  ;;  %v168_v1 = vld [vmem:[%s1776_s1 + $0x8] sm:$0xff] (!%p137_p2)  ;;  %v169_v2 = vld [vmem:[%s1776_s1 + $0x10] sm:$0xff] (!%p137_p2)  ;;  %v1485_v3 = vmov (!%p137_p2), 0.0|0.0   ;;  %vm1486_vm0 = vmmov (!%p137_p2), 0   ;;  %v1487_v6 = vmov (!%p137_p2), 0.0   ;;  %v278_v33 = vlaneseq (!%p137_p2) }
   0x6   : > { %140 = sbr.rel (%p137_p2) target bundleno = 4411 (0x113b), region = 32  ;;  %1408 = vmatprep.subr.bf16.mxu0 (!%p137_p2), %v1485_v3  ;;  %v1409_v4 = vpack.c.bf16 (!%p137_p2), %v168_v1, %v167_v0  ;;  %v170_v5 = vld [vmem:[%s1776_s1 + $0x18] sm:$0xff] (!%p137_p2)  ;;  %1339 = vmatprep.mubr.msk.f32.mxu0 (!%p137_p2), %vm1486_vm0, %v1487_v6  ;;  %p158_p3 = scmp.lt.s32.totalorder (!%p137_p2), %s1211_s13, 15  ;;  %vm178_vm1 = vcmask (!%p137_p2), 261120   ;;  %v1218_v9 = vld [vmem:[%s1777_s2] ss:$0 sm:$0xff] (!%p137_p2) }
   0x7   : > { %1414 = vmatprep.subr.bf16.mxu1 (!%p137_p2), %v1485_v3  ;;  %1350 = vmatprep.mubr.msk.f32.mxu1 (!%p137_p2), %vm1486_vm0, %v1487_v6  ;;  %v1412_v7 = vpack.c.bf16 (!%p137_p2), %v170_v5, %v169_v2  ;;  %s1488_s28 = smov (!%p137_p2), 32   ;;  %vm259_vm2 = vcmask (!%p137_p2), 523264   ;;  %v1224_v26 = vld [vmem:[%s1776_s1 + $0x20] sm:$0xff] (!%p137_p2)  ;;  %v1225_v27 = vld [vmem:[%s1776_s1 + $0x28] sm:$0xff] (!%p137_p2)  ;;  %v1226_v34 = vld [vmem:[%s1776_s1 + $0x30] sm:$0xff] (!%p137_p2)  ;;  %v279_v37 = vshrl.u32 (!%p137_p2), %v278_v33, 7 }
   0x8   : > { %1410 = vmatpush3.bf16.msra.mxu0 (!%p137_p2), %v1409_v4  ;;  %v1415_v28 = vpack.c.bf16 (!%p137_p2), %v1225_v27, %v1224_v26  ;;  %v1227_v35 = vld [vmem:[%s1776_s1 + $0x38] sm:$0xff] (!%p137_p2)  ;;  %s1489_s10 = smov (!%p137_p2), 96   ;;  %v1221_v42 = vld [vmem:[%s1777_s2 + $0x7] ss:$0 sm:$0xff] (!%p137_p2)  ;;  %v1223_v45 = vld [vmem:[%s1777_s2 + $0xe] ss:$0 sm:$0xff] (!%p137_p2) }
   0x9   : > { %1411 = vmatprep.subr.bf16.mxu0 (!%p137_p2), %v1485_v3  ;;  %v1418_v36 = vpack.c.bf16 (!%p137_p2), %v1227_v35, %v1226_v34  ;;  %v1570_v38 = vsub.s32 (!%p137_p2), 0, %v279_v37  ;;  %v1229_v48 = vld [vmem:[%s1777_s2 + $0x1] ss:$0 sm:$0xff] (!%p137_p2)  ;;  %v1236_v2 = vld [vmem:[%s1776_s1 + $0x48] sm:$0xff] (!%p137_p2)  ;;  %vm1156_vm3 = vcmask (!%p137_p2), 7168  }
   0xa   : > { %1416 = vmatpush3.bf16.msra.mxu1 (!%p137_p2), %v1415_v28  ;;  %v1235_v1 = vld [vmem:[%s1776_s1 + $0x40] sm:$0xff] (!%p137_p2) }
   0xb   : > { %1417 = vmatprep.subr.bf16.mxu1 (!%p137_p2), %v1485_v3  ;;  %v1421_v4 = vpack.c.bf16 (!%p137_p2), %v1236_v2, %v1235_v1 }
   0xc   : > { %1413 = vmatpush3.bf16.msra.mxu0 (!%p137_p2), %v1412_v7 }
   0xd   : > { %s1780_s13 = smov (!%p158_p3, %s1211_s13), 15  ;;  %1420 = vmatprep.subr.bf16.mxu0 %v1485_v3 }
   0xe   : > { %s1216_s22 = sshll.u32 %s1780_s13, 3  ;;  %1419 = vmatpush3.bf16.msra.mxu1 %v1418_v36 }
   0xf   : > { %s161_s25 = scalar_lea.vmem %s1775_s0, %s1216_s22  ;;  %1426 = vmatprep.subr.bf16.mxu1 %v1485_v3  ;;  %s165_s6 = scalar_lea.vmem %s1778_s3, %s1216_s22 }
  0x10   : > { %v166_v8 = vld [vmem:[%s161_s25] sm:$0xff] }
  0x11   : > { %1340 = vmatmul.mubr.msk.f32.vlgmr.msra.gmra.mrb[0].mxu0 %vm178_vm1, %v166_v8 }
  0x12   : > { %1361 = vmatprep.mubr.msk.f32.mxu0 %vm1486_vm0, %v1487_v6  ;;  %1422 = vmatpush3.bf16.msra.mxu0 %v1421_v4 }
  0x13   : > { %1423 = vmatprep.subr.bf16.mxu0 %v1485_v3 }
  0xe4   : > { %v248_v10 = vpop.f32.mrb[0].mxu0 }
  0xe5   : > { %v249_v11 = vadd.f32 %v1218_v9, %v248_v10  ;;  %v1341_v12 = vpop.f32.mrb[1].mxu0  ;;  %v1237_v10 = vld [vmem:[%s1776_s1 + $0x50] sm:$0xff] }
  0xe7   : > { %v252_v13 = vmax.f32 %v249_v11, 0.0  ;;  %v1238_v11 = vld [vmem:[%s1776_s1 + $0x58] sm:$0xff] }
  0xe8   : > { %v1424_v12 = vpack.c.bf16 %v1238_v11, %v1237_v10 }
  0xe9   : > { %v253_v14 = vmul.f32 %v252_v13, %v252_v13 }
  0xea   : > { %1425 = vmatpush3.bf16.msra.mxu0 %v1424_v12 }
  0xeb   : > { %255 = vrot.lane.b32.xlu0 %v253_v14, %s1488_s28  ;;  %1432 = vmatprep.subr.bf16.mxu0 %v1485_v3 }
 0x15d   : > { %v256_v15 = vpop.permute.xlu0 %255 }
 0x15e   : > { %v258_v16 = vsel %vm178_vm1, %v252_v13, %v256_v15 }
 0x15f   : > { %v260_v17 = vsel %vm259_vm2, %v258_v16, 0.0  ;;  %v1232_v16 = vld [vmem:[%s1777_s2 + $0x8] ss:$0 sm:$0xff] }
 0x160   : > { %v261_v18 = vrot.slane %v260_v17, 4 }
 0x162   : > { %v262_v19 = vadd.f32 %v261_v18, %v260_v17 }
 0x164   : > { %v263_v20 = vrot.slane %v262_v19, 2 }
 0x166   : > { %v264_v21 = vadd.f32 %v263_v20, %v262_v19  ;;  %v1234_v19 = vld [vmem:[%s1777_s2 + $0xf] ss:$0 sm:$0xff] }
 0x168   : > { %v265_v22 = vrot.slane %v264_v21, 1 }
 0x16a   : > { %v266_v23 = vadd.f32 %v265_v22, %v264_v21  ;;  %v1240_v22 = vld [vmem:[%s1777_s2 + $0x2] ss:$0 sm:$0xff] }
 0x16c   : > { %v267_v24 = vmul.f32 0.125, %v266_v23 }
 0x16e   : > { %v268_v25 = vmul.f32 %v267_v24, %v267_v24  ;;  %v275_v41 = vsub.f32 %v252_v13, %v267_v24 }
 0x170   : > { %270 = vrot.lane.b32.xlu0 %v268_v25, %s1488_s28 }
 0x1e2   : > { %v271_v29 = vpop.permute.xlu0 %270 }
 0x1e3   : > { %v273_v30 = vsub.f32 %v267_v24, %v271_v29 }
 0x1e5   : > { %v274_v31 = vmax.f32 %v273_v30, 0.0 }
 0x1e7   : > { %v276_v32 = vadd.f32 1e-05, %v274_v31 }
 0x1e9   : > { %1463 = vrsqrt.f32 %v276_v32 }
 0x1f3   : > { %v1464_v39 = vpop.eup %1463 }
 0x1f4   : > { %v281_v40 = vrot.slane %v1464_v39, %v1570_v38 }
 0x1f6   : > { %283 = vrot.lane.b32.xlu1 %v281_v40, %s1489_s10  ;;  %v1246_v40 = vld [vmem:[%s1776_s1 + $0x60] sm:$0xff] }
 0x268   : > { %v284_v43 = vpop.permute.xlu1 %283 }
 0x269   : > { %v286_v44 = vmul.f32 %v284_v43, %v275_v41  ;;  %v1247_v41 = vld [vmem:[%s1776_s1 + $0x68] sm:$0xff] }
 0x26b   : > { %v295_v46 = vmul.f32 %v1221_v42, %v286_v44  ;;  %v1427_v42 = vpack.c.bf16 %v1247_v41, %v1246_v40 }
 0x26d   : > { %v1580_v47 = vadd.f32 %v1223_v45, %v295_v46 }
 0x26f   : > { %1351 = vmatmul.mubr.msk.f32.vlgmr.msra.gmra.mrb[0].mxu1 %vm178_vm1, %v1580_v47 }
 0x270   : > { %1372 = vmatprep.mubr.msk.f32.mxu1 %vm1486_vm0, %v1487_v6  ;;  %1428 = vmatpush3.bf16.msra.mxu1 %v1427_v42 }
 0x271   : > { %1429 = vmatprep.subr.bf16.mxu1 %v1485_v3 }
 0x342   : > { %v387_v49 = vpop.f32.mrb[0].mxu1 }
 0x343   : > { %v388_v50 = vadd.f32 %v1229_v48, %v387_v49  ;;  %v1352_v51 = vpop.f32.mrb[1].mxu1  ;;  %v1248_v48 = vld [vmem:[%s1776_s1 + $0x70] sm:$0xff]  ;;  %v1249_v49 = vld [vmem:[%s1776_s1 + $0x78] sm:$0xff] }
 0x345   : > { %v391_v52 = vmax.f32 %v388_v50, 0.0  ;;  %v1430_v50 = vpack.c.bf16 %v1249_v49, %v1248_v48 }
 0x347   : > { %v392_v53 = vmul.f32 %v391_v52, %v391_v52  ;;  %1431 = vmatpush3.bf16.msra.mxu1 %v1430_v50 }
 0x348   : > { %1438 = vmatprep.subr.bf16.mxu1 %v1485_v3 }
 0x349   : > { %394 = vrot.lane.b32.xlu1 %v392_v53, %s1488_s28 }
 0x3bb   : > { %v395_v54 = vpop.permute.xlu1 %394 }
 0x3bc   : > { %v397_v55 = vsel %vm178_vm1, %v391_v52, %v395_v54  ;;  %v1243_v54 = vld [vmem:[%s1777_s2 + $0x9] ss:$0 sm:$0xff] }
 0x3bd   : > { %v398_v56 = vsel %vm259_vm2, %v397_v55, 0.0 }
 0x3be   : > { %v399_v57 = vrot.slane %v398_v56, 4 }
 0x3c0   : > { %v400_v58 = vadd.f32 %v399_v57, %v398_v56  ;;  %v1245_v57 = vld [vmem:[%s1777_s2 + $0x10] ss:$0 sm:$0xff] }
 0x3c2   : > { %v401_v59 = vrot.slane %v400_v58, 2 }
 0x3c4   : > { %v402_v60 = vadd.f32 %v401_v59, %v400_v58 }
 0x3c6   : > { %v403_v61 = vrot.slane %v402_v60, 1 }
 0x3c8   : > { %v404_v62 = vadd.f32 %v403_v61, %v402_v60  ;;  %v1251_v60 = vld [vmem:[%s1777_s2 + $0x3] ss:$0 sm:$0xff] }
 0x3ca   : > { %v405_v63 = vmul.f32 0.125, %v404_v62 }
 0x3cc   : > { %v406_v0 = vmul.f32 %v405_v63, %v405_v63  ;;  %v413_v15 = vsub.f32 %v391_v52, %v405_v63 }
 0x3ce   : > { %408 = vrot.lane.b32.xlu0 %v406_v0, %s1488_s28 }
 0x440   : > { %v409_v5 = vpop.permute.xlu0 %408 }
 0x441   : > { %v411_v7 = vsub.f32 %v405_v63, %v409_v5 }
 0x443   : > { %v412_v8 = vmax.f32 %v411_v7, 0.0 }
 0x445   : > { %v414_v9 = vadd.f32 1e-05, %v412_v8 }
 0x447   : > { %1465 = vrsqrt.f32 %v414_v9 }
 0x451   : > { %v1466_v13 = vpop.eup %1465 }
 0x452   : > { %v419_v14 = vrot.slane %v1466_v13, %v1570_v38 }
 0x454   : > { %421 = vrot.lane.b32.xlu1 %v419_v14, %s1489_s10 }
 0x4c6   : > { %v422_v17 = vpop.permute.xlu1 %421 }
 0x4c7   : > { %v424_v18 = vmul.f32 %v422_v17, %v413_v15 }
 0x4c9   : > { %v433_v20 = vmul.f32 %v1232_v16, %v424_v18 }
 0x4cb   : > { %v442_v21 = vadd.f32 %v1234_v19, %v433_v20  ;;  %v1257_v19 = vld [vmem:[%s1776_s1 + $0x80] sm:$0xff]  ;;  %v1258_v20 = vld [vmem:[%s1776_s1 + $0x88] sm:$0xff] }
 0x4cd   : > { %1362 = vmatmul.mubr.msk.f32.vlgmr.msra.gmra.mrb[2].mxu0 %vm178_vm1, %v442_v21  ;;  %v1433_v21 = vpack.c.bf16 %v1258_v20, %v1257_v19 }
 0x4ce   : > { %1383 = vmatprep.mubr.msk.f32.mxu0 %vm1486_vm0, %v1487_v6 }
 0x4cf   : > { %1434 = vmatpush3.bf16.msra.mxu0 %v1433_v21 }
 0x4d0   : > { %1435 = vmatprep.subr.bf16.mxu0 %v1485_v3 }
 0x5a0   : > { %v525_v23 = vpop.f32.mrb[2].mxu0 }
 0x5a1   : > { %v526_v24 = vadd.f32 %v1240_v22, %v525_v23  ;;  %v1363_v25 = vpop.f32.mrb[3].mxu0  ;;  %v1259_v22 = vld [vmem:[%s1776_s1 + $0x90] sm:$0xff]  ;;  %v1260_v23 = vld [vmem:[%s1776_s1 + $0x98] sm:$0xff] }
 0x5a3   : > { %v529_v26 = vmax.f32 %v526_v24, 0.0  ;;  %v1436_v24 = vpack.c.bf16 %v1260_v23, %v1259_v22 }
 0x5a5   : > { %v530_v27 = vmul.f32 %v529_v26, %v529_v26  ;;  %1437 = vmatpush3.bf16.msra.mxu0 %v1436_v24 }
 0x5a6   : > { %1444 = vmatprep.subr.bf16.mxu0 %v1485_v3 }
 0x5a7   : > { %532 = vrot.lane.b32.xlu0 %v530_v27, %s1488_s28 }
 0x619   : > { %v533_v28 = vpop.permute.xlu0 %532 }
 0x61a   : > { %v535_v29 = vsel %vm178_vm1, %v529_v26, %v533_v28  ;;  %v1254_v28 = vld [vmem:[%s1777_s2 + $0xa] ss:$0 sm:$0xff] }
 0x61b   : > { %v536_v30 = vsel %vm259_vm2, %v535_v29, 0.0 }
 0x61c   : > { %v537_v31 = vrot.slane %v536_v30, 4 }
 0x61e   : > { %v538_v32 = vadd.f32 %v537_v31, %v536_v30  ;;  %v1256_v31 = vld [vmem:[%s1777_s2 + $0x11] ss:$0 sm:$0xff] }
 0x620   : > { %v539_v33 = vrot.slane %v538_v32, 2 }
 0x622   : > { %v540_v34 = vadd.f32 %v539_v33, %v538_v32 }
 0x624   : > { %v541_v35 = vrot.slane %v540_v34, 1 }
 0x626   : > { %v542_v36 = vadd.f32 %v541_v35, %v540_v34  ;;  %v1262_v35 = vld [vmem:[%s1777_s2 + $0x4] ss:$0 sm:$0xff] }
 0x628   : > { %v543_v37 = vmul.f32 0.125, %v542_v36 }
 0x62a   : > { %v544_v39 = vmul.f32 %v543_v37, %v543_v37  ;;  %v551_v53 = vsub.f32 %v529_v26, %v543_v37 }
 0x62c   : > { %546 = vrot.lane.b32.xlu1 %v544_v39, %s1488_s28 }
 0x69e   : > { %v547_v43 = vpop.permute.xlu1 %546 }
 0x69f   : > { %v549_v44 = vsub.f32 %v543_v37, %v547_v43 }
 0x6a1   : > { %v550_v45 = vmax.f32 %v549_v44, 0.0 }
 0x6a3   : > { %v552_v46 = vadd.f32 1e-05, %v550_v45 }
 0x6a5   : > { %1467 = vrsqrt.f32 %v552_v46 }
 0x6af   : > { %v1468_v51 = vpop.eup %1467 }
 0x6b0   : > { %v557_v52 = vrot.slane %v1468_v51, %v1570_v38 }
 0x6b2   : > { %559 = vrot.lane.b32.xlu0 %v557_v52, %s1489_s10  ;;  %v1268_v52 = vld [vmem:[%s1776_s1 + $0xa0] sm:$0xff] }
 0x724   : > { %v560_v55 = vpop.permute.xlu0 %559 }
 0x725   : > { %v562_v56 = vmul.f32 %v560_v55, %v551_v53  ;;  %v1269_v53 = vld [vmem:[%s1776_s1 + $0xa8] sm:$0xff] }
 0x727   : > { %v571_v58 = vmul.f32 %v1243_v54, %v562_v56  ;;  %v1439_v54 = vpack.c.bf16 %v1269_v53, %v1268_v52 }
 0x729   : > { %v580_v59 = vadd.f32 %v1245_v57, %v571_v58 }
 0x72b   : > { %1373 = vmatmul.mubr.msk.f32.vlgmr.msra.gmra.mrb[2].mxu1 %vm178_vm1, %v580_v59  ;;  %v1270_v59 = vld [vmem:[%s1776_s1 + $0xb0] sm:$0xff] }
 0x72c   : > { %1394 = vmatprep.mubr.msk.f32.mxu1 %vm1486_vm0, %v1487_v6  ;;  %1440 = vmatpush3.bf16.msra.mxu1 %v1439_v54 }
 0x72d   : > { %1441 = vmatprep.subr.bf16.mxu1 %v1485_v3 }
 0x7fe   : > { %v663_v61 = vpop.f32.mrb[2].mxu1 }
 0x7ff   : > { %v664_v62 = vadd.f32 %v1251_v60, %v663_v61  ;;  %v1374_v63 = vpop.f32.mrb[3].mxu1  ;;  %v1271_v60 = vld [vmem:[%s1776_s1 + $0xb8] sm:$0xff] }
 0x800   : > { %v1442_v61 = vpack.c.bf16 %v1271_v60, %v1270_v59 }
 0x801   : > { %v667_v0 = vmax.f32 %v664_v62, 0.0 }
 0x802   : > { %1443 = vmatpush3.bf16.msra.mxu1 %v1442_v61 }
 0x803   : > { %v668_v1 = vmul.f32 %v667_v0, %v667_v0 }
 0x805   : > { %670 = vrot.lane.b32.xlu1 %v668_v1, %s1488_s28  ;;  %v1265_v1 = vld [vmem:[%s1777_s2 + $0xb] ss:$0 sm:$0xff] }
 0x877   : > { %v671_v2 = vpop.permute.xlu1 %670 }
 0x878   : > { %v673_v4 = vsel %vm178_vm1, %v667_v0, %v671_v2 }
 0x879   : > { %v674_v5 = vsel %vm259_vm2, %v673_v4, 0.0 }
 0x87a   : > { %v675_v7 = vrot.slane %v674_v5, 4 }
 0x87c   : > { %v676_v8 = vadd.f32 %v675_v7, %v674_v5  ;;  %v1267_v5 = vld [vmem:[%s1777_s2 + $0x12] ss:$0 sm:$0xff] }
 0x87e   : > { %v677_v9 = vrot.slane %v676_v8, 2 }
 0x880   : > { %v678_v10 = vadd.f32 %v677_v9, %v676_v8  ;;  %v1273_v9 = vld [vmem:[%s1777_s2 + $0x5] ss:$0 sm:$0xff] }
 0x882   : > { %v679_v11 = vrot.slane %v678_v10, 1 }
 0x884   : > { %v680_v12 = vadd.f32 %v679_v11, %v678_v10 }
 0x886   : > { %v681_v13 = vmul.f32 0.125, %v680_v12 }
 0x888   : > { %v682_v14 = vmul.f32 %v681_v13, %v681_v13  ;;  %v689_v27 = vsub.f32 %v667_v0, %v681_v13 }
 0x88a   : > { %684 = vrot.lane.b32.xlu0 %v682_v14, %s1488_s28 }
 0x8fc   : > { %v685_v15 = vpop.permute.xlu0 %684 }
 0x8fd   : > { %v687_v16 = vsub.f32 %v681_v13, %v685_v15 }
 0x8ff   : > { %v688_v17 = vmax.f32 %v687_v16, 0.0 }
 0x901   : > { %v690_v18 = vadd.f32 1e-05, %v688_v17 }
 0x903   : > { %1469 = vrsqrt.f32 %v690_v18 }
 0x90d   : > { %v1470_v25 = vpop.eup %1469 }
 0x90e   : > { %v695_v26 = vrot.slane %v1470_v25, %v1570_v38 }
 0x910   : > { %697 = vrot.lane.b32.xlu1 %v695_v26, %s1489_s10  ;;  %v1279_v26 = vld [vmem:[%s1776_s1 + $0xc0] sm:$0xff] }
 0x982   : > { %v698_v29 = vpop.permute.xlu1 %697 }
 0x983   : > { %v700_v30 = vmul.f32 %v698_v29, %v689_v27  ;;  %v1280_v27 = vld [vmem:[%s1776_s1 + $0xc8] sm:$0xff] }
 0x985   : > { %v709_v32 = vmul.f32 %v1254_v28, %v700_v30  ;;  %v1445_v28 = vpack.c.bf16 %v1280_v27, %v1279_v26 }
 0x987   : > { %v718_v33 = vadd.f32 %v1256_v31, %v709_v32 }
 0x989   : > { %v1680_v34 = vadd.f32 %v718_v33, %v1580_v47  ;;  %v1281_v33 = vld [vmem:[%s1776_s1 + $0xd0] sm:$0xff] }
 0x98b   : > { %1384 = vmatmul.mubr.msk.f32.vlgmr.msra.gmra.mrb[4].mxu0 %vm178_vm1, %v1680_v34 }
 0x98c   : > { %1405 = vmatprep.mubr.msk.f32.mxu0 %vm1486_vm0, %v1487_v6  ;;  %1446 = vmatpush3.bf16.msra.mxu0 %v1445_v28 }
 0x98d   : > { %1447 = vmatprep.subr.bf16.mxu0 %v1485_v3 }
 0xa5e   : > { %v802_v36 = vpop.f32.mrb[4].mxu0 }
 0xa5f   : > { %v803_v37 = vadd.f32 %v1262_v35, %v802_v36  ;;  %v1385_v39 = vpop.f32.mrb[5].mxu0  ;;  %v1282_v35 = vld [vmem:[%s1776_s1 + $0xd8] sm:$0xff] }
 0xa60   : > { %v1448_v36 = vpack.c.bf16 %v1282_v35, %v1281_v33 }
 0xa61   : > { %v806_v40 = vmax.f32 %v803_v37, 0.0 }
 0xa62   : > { %1449 = vmatpush3.bf16.msra.mxu0 %v1448_v36 }
 0xa63   : > { %v807_v41 = vmul.f32 %v806_v40, %v806_v40 }
 0xa65   : > { %809 = vrot.lane.b32.xlu0 %v807_v41, %s1488_s28 }
 0xad7   : > { %v810_v42 = vpop.permute.xlu0 %809 }
 0xad8   : > { %v812_v47 = vsel %vm178_vm1, %v806_v40, %v810_v42 }
 0xad9   : > { %v813_v43 = vsel %vm259_vm2, %v812_v47, 0.0  ;;  %v1278_v47 = vld [vmem:[%s1777_s2 + $0x13] ss:$0 sm:$0xff] }
 0xada   : > { %v814_v44 = vrot.slane %v813_v43, 4 }
 0xadc   : > { %v815_v45 = vadd.f32 %v814_v44, %v813_v43 }
 0xade   : > { %v816_v46 = vrot.slane %v815_v45, 2 }
 0xae0   : > { %v817_v6 = vadd.f32 %v816_v46, %v815_v45  ;;  %v1284_v45 = vld [vmem:[%s1777_s2 + $0x6] ss:$0 sm:$0xff] }
 0xae2   : > { %v818_v48 = vrot.slane %v817_v6, 1 }
 0xae4   : > { %v819_v49 = vadd.f32 %v818_v48, %v817_v6 }
 0xae6   : > { %v820_v50 = vmul.f32 0.125, %v819_v49 }
 0xae8   : > { %v821_v51 = vmul.f32 %v820_v50, %v820_v50  ;;  %v828_v0 = vsub.f32 %v806_v40, %v820_v50  ;;  %v1276_v40 = vld [vmem:[%s1777_s2 + $0xc] ss:$0 sm:$0xff] }
 0xaea   : > { %823 = vrot.lane.b32.xlu1 %v821_v51, %s1488_s28 }
 0xb5c   : > { %v824_v55 = vpop.permute.xlu1 %823 }
 0xb5d   : > { %v826_v56 = vsub.f32 %v820_v50, %v824_v55 }
 0xb5f   : > { %v827_v57 = vmax.f32 %v826_v56, 0.0 }
 0xb61   : > { %v829_v58 = vadd.f32 1e-05, %v827_v57 }
 0xb63   : > { %1471 = vrsqrt.f32 %v829_v58 }
 0xb6d   : > { %v1472_v62 = vpop.eup %1471 }
 0xb6e   : > { %v834_v63 = vrot.slane %v1472_v62, %v1570_v38 }
 0xb70   : > { %836 = vrot.lane.b32.xlu0 %v834_v63, %s1489_s10 }
 0xbe2   : > { %v837_v2 = vpop.permute.xlu0 %836 }
 0xbe3   : > { %v839_v4 = vmul.f32 %v837_v2, %v828_v0 }
 0xbe5   : > { %v848_v7 = vmul.f32 %v1265_v1, %v839_v4 }
 0xbe7   : > { %v857_v8 = vadd.f32 %v1267_v5, %v848_v7  ;;  %v1287_v7 = vld [vmem:[%s1777_s2 + $0xd] ss:$0 sm:$0xff] }
 0xbe9   : > { %1395 = vmatmul.mubr.msk.f32.vlgmr.msra.gmra.mrb[4].mxu1 %vm178_vm1, %v857_v8 }
 0xcbc   : > { %v940_v10 = vpop.f32.mrb[4].mxu1 }
 0xcbd   : > { %v941_v11 = vadd.f32 %v1273_v9, %v940_v10  ;;  %v1396_v12 = vpop.f32.mrb[5].mxu1  ;;  %v1289_v10 = vld [vmem:[%s1777_s2 + $0x14] ss:$0 sm:$0xff] }
 0xcbf   : > { %v944_v13 = vmax.f32 %v941_v11, 0.0 }
 0xcc1   : > { %v945_v14 = vmul.f32 %v944_v13, %v944_v13 }
 0xcc3   : > { %947 = vrot.lane.b32.xlu1 %v945_v14, %s1488_s28 }
 0xd35   : > { %v948_v15 = vpop.permute.xlu1 %947 }
 0xd36   : > { %v950_v16 = vsel %vm178_vm1, %v944_v13, %v948_v15 }
 0xd37   : > { %v951_v17 = vsel %vm259_vm2, %v950_v16, 0.0  ;;  %v1293_v16 = vld [vmem:[%s1777_s2 + $0x16] ss:$0 sm:$0xff] }
 0xd38   : > { %v952_v18 = vrot.slane %v951_v17, 4 }
 0xd3a   : > { %v953_v19 = vadd.f32 %v952_v18, %v951_v17 }
 0xd3c   : > { %v954_v20 = vrot.slane %v953_v19, 2 }
 0xd3e   : > { %v955_v21 = vadd.f32 %v954_v20, %v953_v19 }
 0xd40   : > { %v956_v22 = vrot.slane %v955_v21, 1 }
 0xd42   : > { %v957_v23 = vadd.f32 %v956_v22, %v955_v21 }
 0xd44   : > { %v958_v24 = vmul.f32 0.125, %v957_v23 }
 0xd46   : > { %v959_v25 = vmul.f32 %v958_v24, %v958_v24  ;;  %v966_v3 = vsub.f32 %v944_v13, %v958_v24  ;;  %v1292_v13 = vld [vmem:[%s1777_s2 + $0x15] ss:$0 sm:$0xff] }
 0xd48   : > { %961 = vrot.lane.b32.xlu0 %v959_v25, %s1488_s28 }
 0xdba   : > { %v962_v29 = vpop.permute.xlu0 %961 }
 0xdbb   : > { %v964_v30 = vsub.f32 %v958_v24, %v962_v29 }
 0xdbd   : > { %v965_v31 = vmax.f32 %v964_v30, 0.0 }
 0xdbf   : > { %v967_v32 = vadd.f32 1e-05, %v965_v31 }
 0xdc1   : > { %1473 = vrsqrt.f32 %v967_v32 }
 0xdcb   : > { %v1474_v37 = vpop.eup %1473 }
 0xdcc   : > { %v972_v39 = vrot.slane %v1474_v37, %v1570_v38 }
 0xdce   : > { %974 = vrot.lane.b32.xlu1 %v972_v39, %s1489_s10 }
 0xe40   : > { %v975_v41 = vpop.permute.xlu1 %974 }
 0xe41   : > { %v977_v42 = vmul.f32 %v975_v41, %v966_v3 }
 0xe43   : > { %v986_v43 = vmul.f32 %v1276_v40, %v977_v42 }
 0xe45   : > { %v995_v44 = vadd.f32 %v1278_v47, %v986_v43 }
 0xe47   : > { %1406 = vmatmul.mubr.msk.f32.vlgmr.msra.gmra.mrb[6].mxu0 %vm178_vm1, %v995_v44 }
 0xf1a   : > { %v1078_v46 = vpop.f32.mrb[6].mxu0 }
 0xf1b   : > { %v1079_v6 = vadd.f32 %v1284_v45, %v1078_v46  ;;  %v1407_v48 = vpop.f32.mrb[7].mxu0 }
 0xf1d   : > { %v1082_v49 = vmax.f32 %v1079_v6, 0.0 }
 0xf1f   : > { %v1083_v50 = vmul.f32 %v1082_v49, %v1082_v49 }
 0xf21   : > { %1085 = vrot.lane.b32.xlu0 %v1083_v50, %s1488_s28 }
 0xf93   : > { %v1086_v51 = vpop.permute.xlu0 %1085 }
 0xf94   : > { %v1088_v52 = vsel %vm178_vm1, %v1082_v49, %v1086_v51 }
 0xf95   : > { %v1089_v53 = vsel %vm259_vm2, %v1088_v52, 0.0 }
 0xf96   : > { %v1090_v54 = vrot.slane %v1089_v53, 4 }
 0xf98   : > { %v1091_v55 = vadd.f32 %v1090_v54, %v1089_v53 }
 0xf9a   : > { %v1092_v56 = vrot.slane %v1091_v55, 2 }
 0xf9c   : > { %v1093_v57 = vadd.f32 %v1092_v56, %v1091_v55 }
 0xf9e   : > { %v1094_v58 = vrot.slane %v1093_v57, 1 }
 0xfa0   : > { %v1095_v59 = vadd.f32 %v1094_v58, %v1093_v57 }
 0xfa2   : > { %v1096_v60 = vmul.f32 0.125, %v1095_v59 }
 0xfa4   : > { %v1097_v61 = vmul.f32 %v1096_v60, %v1096_v60  ;;  %v1104_v5 = vsub.f32 %v1082_v49, %v1096_v60 }
 0xfa6   : > { %1099 = vrot.lane.b32.xlu1 %v1097_v61, %s1488_s28 }
0x1018   : > { %v1100_v62 = vpop.permute.xlu1 %1099 }
0x1019   : > { %v1102_v63 = vsub.f32 %v1096_v60, %v1100_v62 }
0x101b   : > { %v1103_v0 = vmax.f32 %v1102_v63, 0.0 }
0x101d   : > { %v1105_v1 = vadd.f32 1e-05, %v1103_v0 }
0x101f   : > { %1475 = vrsqrt.f32 %v1105_v1 }
0x1029   : > { %v1476_v2 = vpop.eup %1475 }
0x102a   : > { %v1110_v4 = vrot.slane %v1476_v2, %v1570_v38 }
0x102c   : > { %1112 = vrot.lane.b32.xlu0 %v1110_v4, %s1489_s10 }
0x109e   : > { %v1113_v8 = vpop.permute.xlu0 %1112 }
0x109f   : > { %v1115_v9 = vmul.f32 %v1113_v8, %v1104_v5 }
0x10a1   : > { %v1124_v11 = vmul.f32 %v1287_v7, %v1115_v9 }
0x10a3   : > { %v1133_v12 = vadd.f32 %v1289_v10, %v1124_v11 }
0x10a5   : > { %v1134_v38 = vadd.f32 %v1133_v12, %v1680_v34 }
0x10a7   : > { %v1145_v14 = vmul.f32 %v1292_v13, %v1134_v38 }
0x10a9   : > { %v1146_v15 = vsel %vm178_vm1, %v1145_v14, 0.0 }
0x10aa   : > { %1147 = vadd.xlane.f32.xlu1 %v1146_v15 }
0x1137   : > { %v1148_v17 = vpop.xlane.xlu1 %1147 }
0x1138   : > { %v1155_v18 = vadd.f32 %v1293_v16, %v1148_v17 }
0x113a   : > { %1157 = vst.msk [vmem:[%s165_s6] sm:$0xff] %vm1156_vm3, %v1155_v18 }
0x113b PF: > { %s13_s12 = sadd.s32 1, %s1483_s12  }
0x113c   : > { %p10_p4 = scmp.ge.s32.totalorder %s13_s12, 18  }
0x113e   :  { %12 = sbr.rel (!%p10_p4) target bundleno = 1 (0x1), region = 90 }

</bundles_post_ra>
